<compile_context>
chip_gen: v5e
topology: v5e:2x2
jax: 0.10.0
libtpu: 0.0.40
codegen_flags: <defaults>
</compile_context>

<pallas_src>
import math

import jax
import jax.numpy as jnp
from jax.experimental import pallas as pl
from jax.experimental.pallas import tpu as pltpu

NUM_CLASSES = 10
D_MODEL = 32
BATCH = 8

_LANE = 128          # pad the class axis to a full lane width
_NEG_BIG = -1.0e30   # bias value for padded class lanes (softmax-safe)


def _make_classifier_kernel(softmax: bool):
    """Build a kernel that emits only the work required for this forward variant."""
    if softmax:
        def kernel(z_ref, w_ref, b_ref, probs_ref):
            # z: (B, D) f32, w: (D, Cp) f32, b: (1, Cp) f32   (Cp = 128, lane-dense)
            logits = jnp.dot(z_ref[...], w_ref[...],
                             preferred_element_type=jnp.float32) + b_ref[...]
            # softmax over the class axis (torch dim=1 for a (B, C) tensor);
            # padded lanes carry -1e30 -> exp underflows to 0, denominator unaffected.
            m = jnp.max(logits, axis=-1, keepdims=True)
            e = jnp.exp(logits - m)
            denom = jnp.sum(e, axis=-1, keepdims=True)
            probs_ref[...] = e * pl.reciprocal(denom, approx=False)
        return kernel

    def kernel(z_ref, w_ref, b_ref, logits_ref):
        logits_ref[...] = jnp.dot(z_ref[...], w_ref[...],
                                  preferred_element_type=jnp.float32) + b_ref[...]
    return kernel


def classifier_forward(x, w_pad, b_pad, num_classes=NUM_CLASSES, softmax=False):
    """Pallas implementation of Classifier.forward.

    x:     (B, D)      f32 features (identity stream: z = x)
    w_pad: (D, 128)    f32 fc weight, zero-padded past num_classes
    b_pad: (1, 128)    f32 fc bias, padded lanes = -1e30
    Returns (logits_or_probs[:, :num_classes], z) mirroring torch's (x, z).
    """
    B, D = x.shape
    Cp = w_pad.shape[1]
    z = x  # identity stream

    out_padded = pl.pallas_call(
        _make_classifier_kernel(softmax),
        out_shape=jax.ShapeDtypeStruct((B, Cp), jnp.float32),
        grid_spec=pltpu.PrefetchScalarGridSpec(
            num_scalar_prefetch=0,
            grid=(),
            in_specs=[
                pl.BlockSpec((B, D), lambda: (0, 0)),
                pl.BlockSpec((D, Cp), lambda: (0, 0)),
                pl.BlockSpec((1, Cp), lambda: (0, 0)),
            ],
            out_specs=pl.BlockSpec((B, Cp), lambda: (0, 0)),
        ),
    )(z, w_pad, b_pad)

    return out_padded[:, :num_classes], z


def init_fc_params(key, d_model, num_classes):
    """Deterministic nn.Linear-style init, pre-padded to a lane-dense class axis."""
    kw, kb = jax.random.split(key)
    bound = 1.0 / math.sqrt(d_model)
    # logical params, stored as (D, C) so the kernel does z @ W directly
    w = jax.random.uniform(kw, (d_model, num_classes), jnp.float32, -bound, bound)
    b = jax.random.uniform(kb, (num_classes,), jnp.float32, -bound, bound)
    # pad class axis to 128: zero weight columns, -1e30 bias lanes (softmax-safe)
    w_pad = jnp.zeros((d_model, _LANE), jnp.float32).at[:, :num_classes].set(w)
    b_pad = jnp.full((1, _LANE), _NEG_BIG, jnp.float32).at[0, :num_classes].set(b)
    return w, b, w_pad, b_pad


if __name__ == "__main__":
    key = jax.random.PRNGKey(0)
    kx, kp = jax.random.split(key)

    x = jax.random.normal(kx, (BATCH, D_MODEL), jnp.float32)
    w, b, w_pad, b_pad = init_fc_params(kp, D_MODEL, NUM_CLASSES)

    # two forward variants of the module; each kernel launch now computes only
    # the output it returns (no dead softmax work / no dead logits writeback)
    logits, z = classifier_forward(x, w_pad, b_pad, NUM_CLASSES, softmax=False)
    probs, _ = classifier_forward(x, w_pad, b_pad, NUM_CLASSES, softmax=True)
    jax.block_until_ready((logits, probs, z))

    # lightweight sanity check against plain-JAX reference
    ref_logits = x @ w + b
    ref_probs = jax.nn.softmax(ref_logits, axis=1)
    assert jnp.allclose(logits, ref_logits, atol=1e-5, rtol=1e-5)
    assert jnp.allclose(probs, ref_probs, atol=1e-5, rtol=1e-5)
    assert jnp.allclose(z, x)

    print("KERNEL_OK")
</pallas_src>

<mosaic_0001>
module attributes {stable_mosaic.version = 11 : i64} {
  func.func @kernel(%arg0: memref<8x32xf32, #tpu.memory_space<vmem>>, %arg1: memref<32x128xf32, #tpu.memory_space<vmem>>, %arg2: memref<1x128xf32, #tpu.memory_space<vmem>>, %arg3: memref<8x128xf32, #tpu.memory_space<vmem>>) attributes {dimension_semantics = [], scalar_prefetch = 0 : i64, scratch_operands = 0 : i64, tpu.core_type = #tpu.core_type<tc>} {
    %c0 = arith.constant 0 : index
    %c0_0 = arith.constant 0 : index
    %0 = vector.load %arg0[%c0, %c0_0] : memref<8x32xf32, #tpu.memory_space<vmem>>, vector<8x32xf32>
    %c0_1 = arith.constant 0 : index
    %c0_2 = arith.constant 0 : index
    %1 = vector.load %arg1[%c0_1, %c0_2] : memref<32x128xf32, #tpu.memory_space<vmem>>, vector<32x128xf32>
    %cst = arith.constant dense<0.000000e+00> : vector<8x128xf32>
    %2 = tpu.matmul %0, %1, %cst {dimension_numbers = #tpu.dot_dimension_numbers<[1], [0], [0], [1], [0, 0, 1, 1], [], []>} : vector<8x32xf32>, vector<32x128xf32>, vector<8x128xf32> -> vector<8x128xf32>
    %c0_3 = arith.constant 0 : index
    %c0_4 = arith.constant 0 : index
    %3 = vector.load %arg2[%c0_3, %c0_4] : memref<1x128xf32, #tpu.memory_space<vmem>>, vector<1x128xf32>
    %4 = vector.broadcast %3 : vector<1x128xf32> to vector<8x128xf32>
    %5 = arith.addf %2, %4 : vector<8x128xf32>
    %c0_5 = arith.constant 0 : index
    %c0_6 = arith.constant 0 : index
    %6 = vector.load %arg3[%c0_5, %c0_6] : memref<8x128xf32, #tpu.memory_space<vmem>>, vector<8x128xf32>
    tpu.vector_store %arg3[%c0_5, %c0_6], %5 {strides = array<i32>} : memref<8x128xf32, #tpu.memory_space<vmem>>, vector<8x128xf32>,
    return
  }
}

</mosaic_0001>

<bundles_post_ra>
// kernel: tpu_custom_call.1
= control target key start
LH: loop header
LB: loop body
LE: loop exit
PB: predicated region body
PF: predicated region fallthrough
CT: control target
= control target key end

     0   :  { %8 = vsyncpa [#allocation3], 0  ;;  %s219_s0 = inlined_call_operand.hbm [shape: f32[8,32], index: 0, kind: input, shape index: {}]   ;;  %s220_s1 = inlined_call_operand.hbm [shape: f32[32,128], index: 1, kind: input, shape index: {}]   ;;  %s221_s2 = inlined_call_operand.vmem [shape: f32[1,128], index: 2, kind: input, shape index: {}]   ;;  %s222_s3 = inlined_call_operand.hbm [shape: f32[8,128], index: 3, kind: output, shape index: {}]  }
   0x1   :  { %9 = vsyncpa [#allocation6], 0 }
   0x2   :  { %10 = vsyncpa [#allocation4], 0  ;;  %s16_s14 = sshll.u32 %s219_s0, 4  ;;  %s182_s15 = smov [#allocation2]   ;;  %s17_s14 = int_to_ptr.hbm [resolvable:$true] %s16_s14 }
   0x3   :  { %s18_s16 = sshll.u32 %s182_s15, 4  ;;  %s26_s19 = sshll.u32 %s220_s1, 4  ;;  %s19_s16 = int_to_ptr.vmem [resolvable:$true] %s18_s16  ;;  %s27_s19 = int_to_ptr.hbm [resolvable:$true] %s26_s19 }
   0x4   :  { %21 = dma.hbm_to_vmem [thread:$0]  %s17_s14, 128, %s19_s16, [#allocation3]  }
   0x5   :  { %s183_s20 = smov [#allocation5]   ;;  %s184_s22 = smov 128  }
   0x6   :  { %s28_s21 = sshll.u32 %s183_s20, 4  ;;  %s185_s23 = smov 8   ;;  %s29_s21 = int_to_ptr.vmem [resolvable:$true] %s28_s21 }
   0x7   :  { %34 = dma.hbm_to_vmem [thread:$0]  %s27_s19, 512, %s29_s21, [#allocation6], %s184_s22, %s184_s22, %s185_s23  }
   0x8   :  { %176 = dma.done.wait [#allocation3], 128  }
   0x9   :  { %177 = vsyncadd [#allocation3], 4294967168 }
   0xa   :  { %178 = dma.done.wait [#allocation6], 512  }
   0xb   :  { %179 = vsyncadd [#allocation6], 4294966784  ;;  %v49_v0 = vld [vmem:[#allocation5 + $0x18] sm:$0xff]  ;;  %v48_v1 = vld [vmem:[#allocation5 + $0x10] sm:$0xff]  ;;  %vm54_vm0 = vcmask 261120   ;;  %s186_s24 = smov [#allocation7]  }
   0xc   :  { %70 = vmatpush.msra.mxu0 %v49_v0  ;;  %v47_v2 = vld [vmem:[#allocation5 + $0x8] sm:$0xff]  ;;  %v46_v3 = vld [vmem:[#allocation5] sm:$0xff]  ;;  %v45_v4 = vld [vmem:[#allocation2] sm:$0xff]  ;;  %s84_s25 = sshll.u32 %s186_s24, 4  ;;  %s86_s28 = sshll.u32 %s222_s3, 4  ;;  %s85_s25 = int_to_ptr.vmem [resolvable:$true] %s84_s25  ;;  %s87_s28 = int_to_ptr.hbm [resolvable:$true] %s86_s28 }
   0xd   :  { %v103_v5 = vld [vmem:[%s221_s2] ss:$0 sm:$0xff] }
   0xe   :  { %71 = vmatpush.msra.mxu0 %v48_v1 }
  0x10   :  { %72 = vmatpush.msra.mxu0 %v47_v2 }
  0x12   :  { %73 = vmatpush.msra.mxu0 %v46_v3 }
  0x13   :  { %97 = vmatmul.msk.f32.vlgmr.msra.gmra.mxu0 %vm54_vm0, %v45_v4 }
  0x90   :  { %v75_v6 = vpop.f32.mrf.mxu0 }
  0x91   :  { %v76_v7 = vadd.f32 %v103_v5, %v75_v6 }
  0x93   :  { %78 = vst [vmem:[#allocation7] sm:$0xff] %v76_v7 }
  0x94   :  { %89 = dma.vmem_to_hbm [thread:$0]  %s85_s25, 128, %s87_s28, [#allocation4]  }
  0x95   :  { %180 = dma.done.wait [#allocation4], 128  }
  0x96   :  { %181 = vsyncadd [#allocation4], 4294967168 }
  0x97   :  { %94 = vsyncpa [#allocation3], 1 }
  0x98   :  { %95 = vsyncpa [#allocation6], 1 }
  0x99   :  { %96 = vsyncpa [#allocation4], 1 }

</bundles_post_ra>
